<compile_context>
chip_gen: v7x
topology: tpu7x:2x2x1
jax: 0.10.0
libtpu: 0.0.40
codegen_flags: <defaults>
</compile_context>

<pallas_src>
import jax
import jax.numpy as jnp
from jax.experimental import pallas as pl
from jax.experimental.pallas import tpu as pltpu


_LANE = 128
_BLOCK_VMEM_BYTES = 12 * 1024 * 1024   # per input block (x2 double-buffered ~24 MiB)
_VMEM_LIMIT_BYTES = 32 * 1024 * 1024   # safe on v5e/v6e/v7x


def _round_up(a, m):
    return -(-a // m) * m


def _sublane_tile(itemsize):
    # sub-32-bit dtypes pack along sublanes: f32 -> 8, bf16/f16 -> 16, int8 -> 32
    return {4: 8, 2: 16, 1: 32}.get(itemsize, 8)


def _plan(hw, bc, itemsize, max_block_vmem_bytes):
    """Pick (chunk, n_chunks, n_par) for the (bc, hw) view.

    chunk is the per-step column count: either == hw (single full-array block,
    no alignment needed) or a multiple of 128.  VMEM footprint of one block is
    ceil(bc / sublane_tile) * sublane_tile * chunk * itemsize.
    """
    bc_pad = _round_up(bc, _sublane_tile(itemsize))
    col_bytes = bc_pad * itemsize
    max_chunk = max(_LANE, (max_block_vmem_bytes // (col_bytes * _LANE)) * _LANE)

    if hw <= max_chunk:
        return hw, 1, 1                       # small-input fast path: one grid step

    n_chunks = -(-hw // max_chunk)
    if n_chunks % 2 != 0:
        n_chunks += 1                         # try to even the count for 2-way split
    chunk = _round_up(-(-hw // n_chunks), _LANE)
    n_chunks = -(-hw // chunk)                # re-derive (rounding may reduce it)
    n_par = 2 if (n_chunks >= 2 and n_chunks % 2 == 0) else 1
    return chunk, n_chunks, n_par


def gray_loss(x, *, max_block_vmem_bytes=_BLOCK_VMEM_BYTES):
    """GrayLoss forward. x: (B, C, H, W) with C=3. Returns scalar float32."""
    B, C, H, W = x.shape
    hw = H * W
    bc = B * C
    itemsize = jnp.dtype(x.dtype).itemsize

    chunk, n_chunks, n_par = _plan(hw, bc, itemsize, max_block_vmem_bytes)
    cpp = n_chunks // n_par                   # chunks per partition
    rem = hw - (n_chunks - 1) * chunk         # valid columns in the last chunk

    x2d = x.reshape(bc, hw)                   # free reshape, no HBM copy

    def kernel(x_ref, o_ref):
        p = pl.program_id(0)                  # partition ("parallel")
        s = pl.program_id(1)                  # chunk within partition ("arbitrary")

        @pl.when(s == 0)
        def _():
            o_ref[...] = jnp.zeros_like(o_ref)

        x_blk = x_ref[...].astype(jnp.float32)   # upcast in-kernel (bf16/u8 safe)

        def add_full():
            o_ref[...] += jnp.sum(x_blk, axis=-1)[None, None, :]

        if rem == chunk:
            # All chunks fully in-bounds (also covers the single-block fast path).
            add_full()
        else:
            g = p * cpp + s                   # global chunk index (static cpp)

            @pl.when(g != n_chunks - 1)
            def _():
                add_full()

            @pl.when(g == n_chunks - 1)
            def _():
                # Ragged tail: columns >= rem lie past the true H*W; mask them.
                col = jax.lax.broadcasted_iota(jnp.int32, x_blk.shape, 1)
                masked = jnp.where(col < rem, x_blk, 0.0)
                o_ref[...] += jnp.sum(masked, axis=-1)[None, None, :]

    partials = pl.pallas_call(
        kernel,
        out_shape=jax.ShapeDtypeStruct((n_par, 1, bc), jnp.float32),
        grid_spec=pltpu.PrefetchScalarGridSpec(
            num_scalar_prefetch=0,
            grid=(n_par, cpp),                # reduction (spatial chunk) axis last
            in_specs=[pl.BlockSpec((bc, chunk), lambda p, s: (0, p * cpp + s))],
            out_specs=pl.BlockSpec((1, 1, bc), lambda p, s: (p, 0, 0)),
        ),
        compiler_params=pltpu.CompilerParams(
            dimension_semantics=("parallel", "arbitrary"),
            vmem_limit_bytes=_VMEM_LIMIT_BYTES,
        ),
        cost_estimate=pl.CostEstimate(
            flops=B * C * hw,
            transcendentals=0,
            bytes_accessed=B * C * hw * itemsize + n_par * bc * 4,
        ),
    )(x2d)

    # Tiny per-batch epilogue in plain XLA.
    sums = jnp.sum(partials, axis=0)[0]          # (B*C,) total spatial sums
    mean_c = sums.reshape(B, C) * (1.0 / hw)     # (B, C) spatial means
    d = (mean_c - 0.5) ** 2                      # D_c
    k = jnp.sqrt(jnp.sum(d * d, axis=-1))        # sqrt(Dr^2 + Dg^2 + Db^2)
    return jnp.mean(k)


def gray_loss_ref(x):
    mean_rgb = jnp.mean(x, axis=(2, 3), keepdims=True)
    d = (mean_rgb - 0.5) ** 2
    k = jnp.sqrt(jnp.sum(d ** 2, axis=1, keepdims=True))
    return jnp.mean(k)


if __name__ == "__main__":
    key = jax.random.PRNGKey(0)
    k1, k2, k3 = jax.random.split(key, 3)

    ok = True

    # 1) Small aligned input -> single-block fast path.
    x1 = jax.random.uniform(k1, (2, 3, 16, 16), dtype=jnp.float32)
    o1 = jax.block_until_ready(gray_loss(x1))
    r1 = jax.block_until_ready(gray_loss_ref(x1))
    ok = ok and bool(jnp.allclose(o1, r1, rtol=1e-5, atol=1e-6))

    # 2) Non-128-aligned spatial size with a tiny block override -> exercises
    #    the chunked path: 2-way parallel grid + in-kernel ragged-tail masking.
    x2 = jax.random.uniform(k2, (2, 3, 20, 25), dtype=jnp.float32)
    o2 = jax.block_until_ready(gray_loss(x2, max_block_vmem_bytes=4096))
    r2 = jax.block_until_ready(gray_loss_ref(x2))
    ok = ok and bool(jnp.allclose(o2, r2, rtol=1e-5, atol=1e-6))

    # 3) Odd, non-aligned spatial size on the fast path (full-dim block, no pad).
    x3 = jax.random.uniform(k3, (1, 3, 13, 11), dtype=jnp.float32)
    o3 = jax.block_until_ready(gray_loss(x3))
    r3 = jax.block_until_ready(gray_loss_ref(x3))
    ok = ok and bool(jnp.allclose(o3, r3, rtol=1e-5, atol=1e-6))

    assert ok, ((o1, r1), (o2, r2), (o3, r3))
    print("KERNEL_OK")
</pallas_src>

<mosaic_0001>
module attributes {stable_mosaic.version = 11 : i64} {
  func.func @kernel(%arg0: i32, %arg1: i32, %arg2: memref<6x256xf32, #tpu.memory_space<vmem>>, %arg3: memref<1x1x6xf32, #tpu.memory_space<vmem>>) attributes {dimension_semantics = [#tpu.dimension_semantics<parallel>, #tpu.dimension_semantics<arbitrary>], iteration_bounds = array<i64: 1, 1>, scalar_prefetch = 0 : i64, scratch_operands = 0 : i64, tpu.core_type = #tpu.core_type<tc>, window_params = [{transform_indices = @transform_0, window_bounds = array<i64: 6, 256>}, {transform_indices = @transform_1, window_bounds = array<i64: 1, 1, 6>}]} {
    %c0_i32 = arith.constant 0 : i32
    %0 = arith.cmpi eq, %arg1, %c0_i32 : i32
    %1 = arith.extui %0 : i1 to i32
    %c0_i32_0 = arith.constant 0 : i32
    %2 = arith.cmpi ne, %1, %c0_i32_0 : i32
    scf.if %2 {
      %cst_8 = arith.constant 0.000000e+00 : f32
      %9 = vector.broadcast %cst_8 : f32 to vector<1x1x6xf32>
      %c0_9 = arith.constant 0 : index
      %c0_10 = arith.constant 0 : index
      %c0_11 = arith.constant 0 : index
      %10 = vector.load %arg3[%c0_9, %c0_10, %c0_11] : memref<1x1x6xf32, #tpu.memory_space<vmem>>, vector<1x1x6xf32>
      tpu.vector_store %arg3[%c0_9, %c0_10, %c0_11], %9 {strides = array<i32>} : memref<1x1x6xf32, #tpu.memory_space<vmem>>, vector<1x1x6xf32>,
    } else {
    }
    %c0 = arith.constant 0 : index
    %c0_1 = arith.constant 0 : index
    %3 = vector.load %arg2[%c0, %c0_1] : memref<6x256xf32, #tpu.memory_space<vmem>>, vector<6x256xf32>
    %c0_2 = arith.constant 0 : index
    %c0_3 = arith.constant 0 : index
    %c0_4 = arith.constant 0 : index
    %4 = vector.load %arg3[%c0_2, %c0_3, %c0_4] : memref<1x1x6xf32, #tpu.memory_space<vmem>>, vector<1x1x6xf32>
    %cst = arith.constant dense<0.000000e+00> : vector<6xf32>
    %5 = vector.multi_reduction <add>, %3, %cst [1] : vector<6x256xf32> to vector<6xf32>
    %6 = vector.shape_cast %5 : vector<6xf32> to vector<1x1x6xf32>
    %7 = arith.addf %4, %6 : vector<1x1x6xf32>
    %c0_5 = arith.constant 0 : index
    %c0_6 = arith.constant 0 : index
    %c0_7 = arith.constant 0 : index
    %8 = vector.load %arg3[%c0_5, %c0_6, %c0_7] : memref<1x1x6xf32, #tpu.memory_space<vmem>>, vector<1x1x6xf32>
    tpu.vector_store %arg3[%c0_5, %c0_6, %c0_7], %7 {strides = array<i32>} : memref<1x1x6xf32, #tpu.memory_space<vmem>>, vector<1x1x6xf32>,
    return
  }
  func.func @transform_0(%arg0: i32, %arg1: i32) -> (i32, i32) {
    %c1_i32 = arith.constant 1 : i32
    %0 = arith.muli %arg0, %c1_i32 : i32
    %1 = arith.addi %0, %arg1 : i32
    %c0_i32 = arith.constant 0 : i32
    %c0_i32_0 = arith.constant 0 : i32
    return %c0_i32, %1 : i32, i32
  }
  func.func @transform_1(%arg0: i32, %arg1: i32) -> (i32, i32, i32) {
    %c0_i32 = arith.constant 0 : i32
    %c0_i32_0 = arith.constant 0 : i32
    %c0_i32_1 = arith.constant 0 : i32
    return %arg0, %c0_i32, %c0_i32_0 : i32, i32, i32
  }
}

</mosaic_0001>

<bundles_post_ra>
// kernel: tpu_custom_call.1
= control target key start
LH: loop header
LB: loop body
LE: loop exit
PB: predicated region body
PF: predicated region fallthrough
CT: control target
= control target key end

     0   :  { %6 = vsyncpa [#allocation3], 0  ;;  %s244_s0 = inlined_call_operand.hbm [shape: f32[6,256], index: 0, kind: input, shape index: {}]   ;;  %s245_s1 = inlined_call_operand.hbm [shape: f32[1,1,6], index: 1, kind: output, shape index: {}]  }
   0x1   :  { %7 = vsyncpa [#allocation4], 0  ;;  %s203_s6 = smov [#allocation2]   ;;  %s155_s10 = scalar_lea.hbm %s244_s0, 256 }
   0x2   :  { %s18_s7 = sshll.u32 %s203_s6, 4  ;;  %p156_p0 = scmp.ne.s32.totalorder %s244_s0, %s155_s10  ;;  %s19_s7 = int_to_ptr.vmem [resolvable:$true] %s18_s7 }
   0x3   :  { %p159_p1 = scmp.lt.u32.totalorder %s155_s10, %s244_s0 }
   0x5   :  { %p161_p2 = pnand %p159_p1, %p156_p0 }
   0x7   :  { %164 = shalt.err (!%p161_p2)
}
   0x8   :  { %s165_s15 = scalar_lea.vmem %s19_s7, 256  ;;  %p170_p4 = scmp.lt.s32.totalorder %s19_s7, %s19_s7 }
   0x9   :  { %p166_p3 = scmp.ne.s32.totalorder %s19_s7, %s165_s15  ;;  %p171_p5 = scmp.lt.s32.totalorder %s165_s15, %s165_s15 }
   0xb   :  { %p172_p6 = por %p171_p5, %p170_p4 }
   0xd   :  { %p173_p7 = pnand %p172_p6, %p166_p3 }
   0xf   :  { %176 = shalt.err (!%p173_p7)
}
  0x10   :  { %21 = dma.hbm_to_vmem [thread:$0]  %s244_s0, 256, %s19_s7, [#allocation3]  }
  0x11   :  { %199 = dma.done.wait [#allocation3], 256  }
  0x12   :  { %200 = vsyncadd [#allocation3], 4294967040  ;;  %vm31_vm0 = vcmask 40960   ;;  %v204_v0 = vmov 0.0   ;;  %vm36_vm1 = vcmask 1045504   ;;  %v205_v6 = vmov 0  }
  0x13   :  { %32 = vst.msk [vmem:[#allocation5] sm:$0x1] %vm31_vm0, %v204_v0  ;;  %v33_v1 = vld [vmem:[#allocation2] sm:$0x3f]  ;;  %v34_v2 = vld [vmem:[#allocation2 + $0x8] sm:$0x3f]  ;;  %154 = vset.pattern.permute.xlu0 %v205_v6  ;;  %v43_v7 = vlaneseq }
  0x14   :  { %v37_v3 = vsel %vm36_vm1, %v33_v1, 0.0  ;;  %v38_v4 = vsel %vm36_vm1, %v34_v2, 0.0  ;;  %v206_v11 = vmov 1966171168   ;;  %s207_s0 = smov [#allocation5]  }
  0x15   :  { %v39_v5 = vadd.f32 %v38_v4, %v37_v3  ;;  %v44_v8 = vshrl.u32 %v43_v7, 7  ;;  %v111_v9 = vand.u32 127, %v43_v7  ;;  %v71_v12 = vunpack.c.l.s4 %v206_v11  ;;  %s140_s18 = sshll.u32 %s207_s0, 4  ;;  %s141_s18 = int_to_ptr.vmem [resolvable:$true] %s140_s18 }
  0x16   :  { %s177_s19 = scalar_lea.vmem %s141_s18, 16  ;;  %s181_s20 = scalar_lea.vmem %s141_s18, 32 }
  0x17   :  { %40 = vadd.xlane.f32.xlu0 %v39_v5  ;;  %v114_v10 = vsub.s32 %v111_v9, %v44_v8  ;;  %v72_v13 = vunpack.c.0.s8 %v71_v12  ;;  %v45_v14 = vsub.s32 0, %v44_v8  ;;  %v49_v15 = vsub.s32 1, %v44_v8  ;;  %p178_p8 = scmp.ne.s32.totalorder %s141_s18, %s177_s19  ;;  %p182_p9 = scmp.lt.s32.totalorder %s141_s18, %s141_s18 }
  0x18   :  { %v53_v16 = vsub.s32 2, %v44_v8  ;;  %v57_v17 = vsub.s32 3, %v44_v8  ;;  %v61_v18 = vsub.s32 4, %v44_v8  ;;  %v65_v19 = vsub.s32 5, %v44_v8  ;;  %p183_p10 = scmp.lt.s32.totalorder %s181_s20, %s177_s19 }
  0x19   :  { %v75_v21 = vsub.s32 %v72_v13, %v44_v8 }
  0x1a   :  { %v35_v41 = vld [vmem:[#allocation5] sm:$0x1]  ;;  %p184_p11 = por %p183_p10, %p182_p9 }
  0x1c   :  { %p185_p12 = pnand %p184_p11, %p178_p8 }
  0xa4   :  { %v41_v20 = vpop.xlane.xlu0 %40 }
  0xa5   :  { %v46_v22 = vrot.slane %v41_v20, %v45_v14  ;;  %v50_v23 = vrot.slane %v41_v20, %v49_v15  ;;  %v54_v24 = vrot.slane %v41_v20, %v53_v16  ;;  %v58_v25 = vrot.slane %v41_v20, %v57_v17 }
  0xa6   :  { %v62_v26 = vrot.slane %v41_v20, %v61_v18  ;;  %v66_v27 = vrot.slane %v41_v20, %v65_v19 }
  0xa7   :  { %v67_v28 = vcombine.low %v46_v22, %v50_v23  ;;  %v68_v29 = vcombine.low %v54_v24, %v58_v25 }
  0xa8   :  { %v69_v30 = vcombine.low %v62_v26, %v66_v27 }
  0xa9   :  { %v76_v31 = vrot.slane %v67_v28, %v75_v21  ;;  %v83_v32 = vrot.slane %v68_v29, %v75_v21 }
  0xaa   :  { %v90_v33 = vrot.slane %v69_v30, %v75_v21 }
  0xab   :  { %v91_v34 = vcombine.low %v76_v31, %v83_v32 }
  0xac   :  { %v105_v36 = vrot.slane %v90_v33, %v75_v21 }
  0xad   :  { %v98_v35 = vrot.slane %v91_v34, %v75_v21 }
  0xaf   :  { %v106_v37 = vcombine.low %v98_v35, %v105_v36 }
  0xb1   :  { %108 = vperm.xlu0 %154, %v106_v37  }
 0x130   :  { %v109_v38 = vpop.permute.xlu0 %108 }
 0x131   :  { %v115_v39 = vrot.slane %v109_v38, %v114_v10 }
 0x133   :  { %v122_v40 = vrot.slane %v115_v39, %v75_v21 }
 0x135   :  { %v129_v42 = vrot.slane %v122_v40, %v75_v21 }
 0x137   :  { %v131_v43 = vadd.f32 %v129_v42, %v35_v41 }
 0x139   :  { %133 = vst.msk [vmem:[#allocation5] sm:$0x1] %vm31_vm0, %v131_v43 }
 0x13a   :  { %188 = shalt.err (!%p185_p12)
}
 0x13b   :  { %s189_s23 = scalar_lea.hbm %s245_s1, 16 }
 0x13c   :  { %p190_p13 = scmp.ne.s32.totalorder %s245_s1, %s189_s23  ;;  %p193_p0 = scmp.lt.u32.totalorder %s189_s23, %s245_s1 }
 0x13e   :  { %p195_p1 = pnand %p193_p0, %p190_p13 }
 0x140   :  { %198 = shalt.err (!%p195_p1)
}
 0x141   :  { %143 = dma.vmem_to_hbm [thread:$0]  %s141_s18, 16, %s245_s1, [#allocation4]  }
 0x142   :  { %201 = dma.done.wait [#allocation4], 16  }
 0x143   :  { %202 = vsyncadd [#allocation4], 4294967280 }
 0x144   :  { %147 = vsyncpa [#allocation3], 1 }
 0x145   :  { %148 = vsyncpa [#allocation4], 1 }

</bundles_post_ra>
